<compile_context>
chip_gen: v7x
topology: tpu7x:2x2x1
jax: 0.10.0
libtpu: 0.0.40
codegen_flags: <defaults>
</compile_context>

<pallas_src>
import jax
import jax.numpy as jnp
from jax.experimental import pallas as pl
from jax.experimental.pallas import tpu as pltpu


def _gemv_kernel(x_ref, w_ref, b_ref, o_ref):
    # x_ref: (TB, D)  VMEM, pipelined per grid step
    # w_ref: (1, D)   VMEM, resident across the grid (constant index_map)
    # b_ref: (1,)     SMEM scalar bias
    # o_ref: (1, TB)  VMEM, lane-dense output row (batch on the lane axis)
    #
    # Single MXU dot contracting D on both operands ( == w @ x.T ) emits the lane-dense
    # (1, TB) row directly.  The MXU is otherwise idle here, so this rides the
    # vector-extended slot and hides completely under the x DMA.
    # (Fallback if a given toolchain inserts a costly x transpose for this layout:
    #  per-row VPU multiply-reduce + one XLU transpose per 128-row chunk.)
    acc = jax.lax.dot_general(
        w_ref[...],
        x_ref[...],
        dimension_numbers=(((1,), (1,)), ((), ())),
        preferred_element_type=jnp.float32,
    )  # (1, TB) f32
    o_ref[...] = (acc + b_ref[0]).astype(o_ref.dtype)


def _vmem_capacity_bytes():
    """Per-generation VMEM capacity (v5e/v6e: 128 MiB, v7x: 64 MiB); conservative fallback."""
    try:
        info = pltpu.get_tpu_info()
        cap = getattr(info, "vmem_capacity_bytes", None)
        if cap:
            return int(cap)
    except Exception:
        pass
    return 64 * 1024 * 1024


def _choose_block_b(rows, D, itemsize):
    """Pick the batch tile (multiple of 128): as big as the VMEM budget allows."""
    vmem_cap = _vmem_capacity_bytes()
    # Target a multi-MiB x tile (measured: small tiles leave 40-70% of HBM roofline on the
    # table) while the double-buffered pair stays well inside VMEM on every generation.
    per_tile_bytes = min(16 * 1024 * 1024, vmem_cap // 5)
    cap_rows = max(128, (per_tile_bytes // max(1, D * itemsize)) // 128 * 128)

    if rows <= 128:
        return 128
    rows128 = (rows // 128) * 128
    tb = min(cap_rows, rows128)
    if tb >= rows and tb >= 256:
        # Prefer >= 2 grid steps so the "parallel" axis shards across v7x's two
        # TensorCores and the x DMA pipelines across step boundaries.
        tb = max(128, (tb // 2) // 128 * 128)
    return tb


def logistic_regression_forward(x, weight, bias, *, block_b=None):
    """x: (B, D), weight: (1, D) (PyTorch nn.Linear layout), bias: (1,) -> (B, 1) in x.dtype."""
    B, D = x.shape
    dtype = x.dtype

    if B < 128:
        # Tiny batches only: pad once up to a single 128-row tile (negligible copy) so the
        # block never exceeds the array's sublane extent.  Larger ragged batches are handled
        # by a partial last block instead of a full-array jnp.pad (which would cost an extra
        # HBM read+write pass on an HBM-bound op).
        x = jnp.pad(x, ((0, 128 - B), (0, 0)))
    rows = x.shape[0]

    tb = _choose_block_b(rows, D, jnp.dtype(dtype).itemsize) if block_b is None else block_b
    assert tb % 128 == 0, "batch tile must be a multiple of 128 (lane-dense output)"

    nb = pl.cdiv(rows, tb)
    out_cols = nb * tb  # output slab is divisible -> every store is a full unmasked vst

    w_row = weight.reshape(1, D).astype(dtype)     # resident weight row, native dtype
    b_smem = bias.reshape(1).astype(jnp.float32)   # scalar bias in SMEM

    # TODO(synk): for very wide D (x tile larger than the VMEM budget at TB=128), add a
    # second (reduction) grid axis with an f32 accumulator (init/finalize via pl.when,
    # dimension_semantics=("parallel", "arbitrary")); D here fits a single block.
    out_slab = pl.pallas_call(
        _gemv_kernel,
        out_shape=jax.ShapeDtypeStruct((1, out_cols), dtype),
        grid=(nb,),
        in_specs=[
            pl.BlockSpec((tb, D), lambda i: (i, 0)),              # pipelined x tiles
            pl.BlockSpec((1, D), lambda i: (0, 0)),               # resident weight row
            pl.BlockSpec(memory_space=pltpu.MemorySpace.SMEM),    # bias scalar in SMEM
        ],
        out_specs=pl.BlockSpec((1, tb), lambda i: (0, i)),        # lane-dense output slab
        compiler_params=pltpu.CompilerParams(
            dimension_semantics=("parallel",),                    # shard grid across TCs
            vmem_limit_bytes=min(int(_vmem_capacity_bytes() * 0.75), 100 * 1024 * 1024),
        ),
    )(x, w_row, b_smem)

    return out_slab[0, :B].reshape(B, 1)


if __name__ == "__main__":
    key = jax.random.PRNGKey(0)
    kx, kw, kb, kx2, kw2, kb2 = jax.random.split(key, 6)

    # Small shapes consistent with LazyLinear(1) on a 2-D input.
    batch, features = 8, 32
    x = jax.random.normal(kx, (batch, features), dtype=jnp.float32)
    w = jax.random.normal(kw, (1, features), dtype=jnp.float32) * 0.1
    b = jax.random.normal(kb, (1,), dtype=jnp.float32) * 0.1

    out = logistic_regression_forward(x, w, b)
    jax.block_until_ready(out)
    ref = x @ w.T + b
    assert out.shape == (batch, 1)
    # Tolerance covers MXU f32 matmuls that may use reduced-precision (bf16) passes.
    assert jnp.allclose(out, ref, atol=1e-2), float(jnp.max(jnp.abs(out - ref)))

    # Multi-tile grid with a ragged tail (1000 % 256 != 0): exercises the pipelined x path,
    # the partial last block (no wrapper-side jnp.pad of x), resident weights, and the
    # lane-dense output slab with nb > 1.
    batch2, features2 = 1000, 256
    x2 = jax.random.normal(kx2, (batch2, features2), dtype=jnp.float32)
    w2 = jax.random.normal(kw2, (1, features2), dtype=jnp.float32) * 0.05
    b2 = jax.random.normal(kb2, (1,), dtype=jnp.float32) * 0.05

    out2 = logistic_regression_forward(x2, w2, b2, block_b=256)
    jax.block_until_ready(out2)
    ref2 = x2 @ w2.T + b2
    assert out2.shape == (batch2, 1)
    assert jnp.allclose(out2, ref2, atol=1e-2), float(jnp.max(jnp.abs(out2 - ref2)))

    # Auto-chosen tile path (tb from the VMEM budget, nb >= 2 preference).
    out3 = logistic_regression_forward(x2, w2, b2)
    jax.block_until_ready(out3)
    assert out3.shape == (batch2, 1)
    assert jnp.allclose(out3, ref2, atol=1e-2), float(jnp.max(jnp.abs(out3 - ref2)))

    print("KERNEL_OK")
</pallas_src>

<mosaic_0001>
module attributes {stable_mosaic.version = 11 : i64} {
  func.func @_gemv_kernel(%arg0: i32, %arg1: memref<128x32xf32, #tpu.memory_space<vmem>>, %arg2: memref<1x32xf32, #tpu.memory_space<vmem>>, %arg3: memref<1xf32, #tpu.memory_space<smem>>, %arg4: memref<1x128xf32, #tpu.memory_space<vmem>>) attributes {dimension_semantics = [#tpu.dimension_semantics<parallel>], iteration_bounds = array<i64: 1>, scalar_prefetch = 0 : i64, scratch_operands = 0 : i64, tpu.core_type = #tpu.core_type<tc>, window_params = [{transform_indices = @transform_0, window_bounds = array<i64: 128, 32>}, {pipeline_mode = #tpu.pipeline_mode<synchronous>, transform_indices = @transform_1, window_bounds = array<i64: 1, 32>}, {transform_indices = @transform_2, window_bounds = array<i64: 1>}, {transform_indices = @transform_3, window_bounds = array<i64: 1, 128>}]} {
    %c0 = arith.constant 0 : index
    %c0_0 = arith.constant 0 : index
    %0 = vector.load %arg2[%c0, %c0_0] : memref<1x32xf32, #tpu.memory_space<vmem>>, vector<1x32xf32>
    %c0_1 = arith.constant 0 : index
    %c0_2 = arith.constant 0 : index
    %1 = vector.load %arg1[%c0_1, %c0_2] : memref<128x32xf32, #tpu.memory_space<vmem>>, vector<128x32xf32>
    %cst = arith.constant dense<0.000000e+00> : vector<1x128xf32>
    %2 = tpu.matmul %0, %1, %cst {dimension_numbers = #tpu.dot_dimension_numbers<[1], [1], [0], [0], [0, 0, 1, 0], [], []>} : vector<1x32xf32>, vector<128x32xf32>, vector<1x128xf32> -> vector<1x128xf32>
    %c0_3 = arith.constant 0 : index
    %3 = memref.load %arg3[%c0_3] : memref<1xf32, #tpu.memory_space<smem>>
    %4 = vector.broadcast %3 : f32 to vector<1x128xf32>
    %5 = arith.addf %2, %4 : vector<1x128xf32>
    %c0_4 = arith.constant 0 : index
    %c0_5 = arith.constant 0 : index
    %6 = vector.load %arg4[%c0_4, %c0_5] : memref<1x128xf32, #tpu.memory_space<vmem>>, vector<1x128xf32>
    tpu.vector_store %arg4[%c0_4, %c0_5], %5 {strides = array<i32>} : memref<1x128xf32, #tpu.memory_space<vmem>>, vector<1x128xf32>,
    return
  }
  func.func @transform_0(%arg0: i32) -> (i32, i32) {
    %c0_i32 = arith.constant 0 : i32
    %c0_i32_0 = arith.constant 0 : i32
    return %arg0, %c0_i32 : i32, i32
  }
  func.func @transform_1(%arg0: i32) -> (i32, i32) {
    %c0_i32 = arith.constant 0 : i32
    %c0_i32_0 = arith.constant 0 : i32
    %c0_i32_1 = arith.constant 0 : i32
    return %c0_i32, %c0_i32_0 : i32, i32
  }
  func.func @transform_2(%arg0: i32) -> i32 {
    %c0_i32 = arith.constant 0 : i32
    %c0_i32_0 = arith.constant 0 : i32
    return %c0_i32 : i32
  }
  func.func @transform_3(%arg0: i32) -> (i32, i32) {
    %c0_i32 = arith.constant 0 : i32
    %c0_i32_0 = arith.constant 0 : i32
    return %c0_i32, %arg0 : i32, i32
  }
}

</mosaic_0001>

<bundles_post_ra>
// kernel: tpu_custom_call.1
= control target key start
LH: loop header
LB: loop body
LE: loop exit
PB: predicated region body
PF: predicated region fallthrough
CT: control target
= control target key end

     0   :  { %vm35_vm0 = vcmask 261120   ;;  %v301_v2 = vmov 0.0|0.0   ;;  %vm302_vm2 = vmmov 0   ;;  %v303_v5 = vmov 0.0   ;;  %s414_s0 = inlined_call_operand.vmem [shape: f32[128,32], index: 0, kind: input, shape index: {}]   ;;  %s415_s1 = inlined_call_operand.vmem [shape: f32[1,32], index: 1, kind: input, shape index: {}]   ;;  %s416_s2 = inlined_call_operand.<no memory space> [shape: f32[1], index: 2, kind: input, shape index: {}]   ;;  %s417_s3 = inlined_call_operand.hbm [shape: f32[1,128], index: 3, kind: output, shape index: {}]  }
   0x1   :  { %v17_v0 = vld [vmem:[%s414_s0] sm:$0xff]  ;;  %v18_v1 = vld [vmem:[%s414_s0 + $0x8] sm:$0xff]  ;;  %241 = vmatprep.subr.bf16.mxu0 %v301_v2  ;;  %vm333_vm1 = vmpackc.low %vm35_vm0, %vm35_vm0  ;;  %238 = vmatprep.mubr.msk.f32.mxu0 %vm302_vm2, %v303_v5 }
   0x2   :  { %v242_v3 = vpack.c.bf16 %v18_v1, %v17_v0  ;;  %v19_v6 = vld [vmem:[%s414_s0 + $0x10] sm:$0xff]  ;;  %v20_v7 = vld [vmem:[%s414_s0 + $0x18] sm:$0xff] }
   0x4   :  { %244 = vmatpush3.bf16.xpose.msk.msra.mxu0 %vm333_vm1, %v242_v3 }
   0x5   :  { %245 = vmatprep.subr.bf16.mxu0 %v301_v2 }
   0x6   :  { %9 = vsyncpa [#allocation4], 0  ;;  %v246_v8 = vpack.c.bf16 %v20_v7, %v19_v6  ;;  %v21_v9 = vld [vmem:[%s414_s0 + $0x20] sm:$0xff]  ;;  %v22_v10 = vld [vmem:[%s414_s0 + $0x28] sm:$0xff]  ;;  %v34_v28 = vstv %s416_s2  ;;  %s304_s21 = smov [#allocation3]  }
   0x7   :  { %v250_v11 = vpack.c.bf16 %v22_v10, %v21_v9  ;;  %v23_v12 = vld [vmem:[%s414_s0 + $0x30] sm:$0xff]  ;;  %v24_v13 = vld [vmem:[%s414_s0 + $0x38] sm:$0xff]  ;;  %v25_v15 = vld [vmem:[%s414_s0 + $0x40] sm:$0xff]  ;;  %s164_s22 = sshll.u32 %s304_s21, 4  ;;  %s165_s22 = int_to_ptr.vmem [resolvable:$true] %s164_s22 }
   0x8   :  { %v254_v14 = vpack.c.bf16 %v24_v13, %v23_v12  ;;  %v26_v16 = vld [vmem:[%s414_s0 + $0x48] sm:$0xff]  ;;  %v27_v18 = vld [vmem:[%s414_s0 + $0x50] sm:$0xff]  ;;  %v28_v19 = vld [vmem:[%s414_s0 + $0x58] sm:$0xff]  ;;  %s281_s23 = scalar_lea.vmem %s165_s22, 32  ;;  %p282_p1 = scmp.lt.s32.totalorder %s165_s22, %s165_s22 }
   0x9   :  { %v258_v17 = vpack.c.bf16 %v26_v16, %v25_v15  ;;  %v262_v20 = vpack.c.bf16 %v28_v19, %v27_v18  ;;  %v29_v21 = vld [vmem:[%s414_s0 + $0x60] sm:$0xff]  ;;  %v30_v22 = vld [vmem:[%s414_s0 + $0x68] sm:$0xff]  ;;  %v31_v24 = vld [vmem:[%s414_s0 + $0x70] sm:$0xff] }
   0xa   :  { %v266_v23 = vpack.c.bf16 %v30_v22, %v29_v21  ;;  %v32_v25 = vld [vmem:[%s414_s0 + $0x78] sm:$0xff]  ;;  %v16_v27 = vld [vmem:[%s415_s1] sm:$0x1]  ;;  %s277_s0 = scalar_lea.vmem %s165_s22, 16 }
   0xb   :  { %v270_v26 = vpack.c.bf16 %v32_v25, %v31_v24  ;;  %p278_p0 = scmp.ne.s32.totalorder %s165_s22, %s277_s0  ;;  %p283_p2 = scmp.lt.s32.totalorder %s281_s23, %s277_s0 }
   0xc   :  { %248 = vmatpush3.bf16.xpose.msk.msra.mxu0 %vm333_vm1, %v246_v8 }
   0xd   :  { %249 = vmatprep.subr.bf16.mxu0 %v301_v2  ;;  %p284_p3 = por %p283_p2, %p282_p1 }
   0xf   :  { %p285_p4 = pnand %p284_p3, %p278_p0 }
  0x14   :  { %252 = vmatpush3.bf16.xpose.msk.msra.mxu0 %vm333_vm1, %v250_v11 }
  0x15   :  { %253 = vmatprep.subr.bf16.mxu0 %v301_v2 }
  0x1c   :  { %256 = vmatpush3.bf16.xpose.msk.msra.mxu0 %vm333_vm1, %v254_v14 }
  0x1d   :  { %257 = vmatprep.subr.bf16.mxu0 %v301_v2 }
  0x24   :  { %260 = vmatpush3.bf16.xpose.msk.msra.mxu0 %vm333_vm1, %v258_v17 }
  0x25   :  { %261 = vmatprep.subr.bf16.mxu0 %v301_v2 }
  0x2c   :  { %264 = vmatpush3.bf16.xpose.msk.msra.mxu0 %vm333_vm1, %v262_v20 }
  0x2d   :  { %265 = vmatprep.subr.bf16.mxu0 %v301_v2 }
  0x34   :  { %268 = vmatpush3.bf16.xpose.msk.msra.mxu0 %vm333_vm1, %v266_v23 }
  0x35   :  { %269 = vmatprep.subr.bf16.mxu0 %v301_v2 }
  0x3c   :  { %272 = vmatpush3.bf16.xpose.msk.msra.mxu0 %vm333_vm1, %v270_v26 }
  0x43   :  { %239 = vmatmul.mubr.msk.f32.vlgmr.msra.gmra.mrb[0].mxu0 %vm35_vm0, %v16_v27 }
 0x116   :  { %v153_v29 = vpop.f32.mrb[0].mxu0 }
 0x117   :  { %v154_v30 = vadd.f32 %v153_v29, %v34_v28  ;;  %v240_v31 = vpop.f32.mrb[1].mxu0 }
 0x119   :  { %157 = vst [vmem:[#allocation3] sm:$0x1] %v154_v30 }
 0x11a   :  { %288 = shalt.err (!%p285_p4)
}
 0x11b   :  { %s289_s25 = scalar_lea.hbm %s417_s3, 16 }
 0x11c   :  { %p290_p5 = scmp.ne.s32.totalorder %s417_s3, %s289_s25  ;;  %p293_p6 = scmp.lt.u32.totalorder %s289_s25, %s417_s3 }
 0x11e   :  { %p295_p7 = pnand %p293_p6, %p290_p5 }
 0x120   :  { %298 = shalt.err (!%p295_p7)
}
 0x121   :  { %167 = dma.vmem_to_hbm [thread:$0]  %s165_s22, 16, %s417_s3, [#allocation4]  }
 0x122   :  { %299 = dma.done.wait [#allocation4], 16  }
 0x123   :  { %300 = vsyncadd [#allocation4], 4294967280 }
 0x124   :  { %171 = vsyncpa [#allocation4], 1 }

</bundles_post_ra>
